<compile_context>
chip_gen: v5e
topology: v5e:2x2
jax: 0.10.0
libtpu: 0.0.40
codegen_flags: <defaults>
</compile_context>

<pallas_src>
import math

import jax
import jax.numpy as jnp
from jax.experimental import pallas as pl
from jax.experimental.pallas import tpu as pltpu


# ---------------------------------------------------------------------------
# Module constants (from the PyTorch forward).
# ---------------------------------------------------------------------------
_P01, _P11, _P21 = -0.000287, 0.266, -0.1097                   # f polynomial
_CID = (0.11 / 75.0, 0.179 / 75.0, 0.238 / 75.0, 0.388 / 75.0, 0.507 / 75.0)
_A0 = (0.001309, -0.0025, -0.000954, -0.00734, -0.01017)
_A1 = (0.00619, 0.00303, 0.00187, 0.001117, 0.000426)
_A2 = (-0.009, -0.00484, 0.001877, 0.00752, 0.00837)
_A3 = (0.001383, 0.0175, 0.01502, 0.009, 0.00413)
_THR = (0.15, 0.23, 0.32, 0.39)
# sigmoid(10*(f - thr)) = 1 / (1 + exp(10*thr) * exp(-10*f))
_CEXP = tuple(math.exp(10.0 * t) for t in _THR)


def _round_up(x, m):
    return ((x + m - 1) // m) * m


# ---------------------------------------------------------------------------
# Kernel
# ---------------------------------------------------------------------------
def _make_kernel(C, kh, kw, wp_pad, R, K, khat, O, mxu_dtype):
    N = R * wp_pad  # lane width of one tile (multiple of 128)

    def kernel(band_ref, what_ref, o_ref):
        # band_ref: (1, 1, C, (R+kh)*wp_pad)  mxu dtype, flattened (row, col) lanes
        # what_ref: (6*O, khat)               mxu dtype, stacked coefficient matrix
        # o_ref   : (1, O, N)                 f32, lane-dense output tile
        #
        # In-kernel unfold: for each kernel offset (i, j) the contribution to
        # output lane (oy*wp_pad + ox) lives at band lane (oy+i)*wp_pad + (ox+j),
        # i.e. a STATIC shifted slice of the flattened band.
        slabs = []
        for i in range(kh):
            for j in range(kw):
                s0 = i * wp_pad + j
                slabs.append(band_ref[0, 0, :, s0:s0 + N])        # (C, N)
        x = jnp.concatenate(slabs, axis=0)                        # (K, N)

        # Element-wise powers in f32 (safe on every TPU generation); matmul
        # operands in mxu_dtype (f32 or bf16).
        xf = x.astype(jnp.float32)
        x2 = xf * xf
        x3 = x2 * xf
        ones = jnp.ones((khat - 3 * K, N), dtype=mxu_dtype)       # bias rows + pad
        xhat = jnp.concatenate(
            [x, x2.astype(mxu_dtype), x3.astype(mxu_dtype), ones], axis=0)  # (khat, N)

        # Single stacked MXU pass: rows [f | g1 | g2-g1 | g3-g2 | g4-g3 | g5-g4]
        m = jnp.dot(what_ref[...], xhat, preferred_element_type=jnp.float32)  # (6O, N)

        f = m[0:O]
        acc = m[O:2 * O]                                          # g1
        # Hoisted, clamped exponential (1 EUP exp instead of 4).
        e = jnp.exp(jnp.minimum(-10.0 * f, 60.0))
        for idx in range(4):
            t = pl.reciprocal(1.0 + _CEXP[idx] * e, approx=True)  # EUP reciprocal
            acc = acc + t * m[(2 + idx) * O:(3 + idx) * O]

        o_ref[0] = acc.astype(o_ref.dtype)

    return kernel


# ---------------------------------------------------------------------------
# Host-side wrapper
# ---------------------------------------------------------------------------
def custom_conv2_forward(img, weights, identity_kernel, kernel_size, stride,
                         padding=0, *, mxu_dtype=jnp.float32, tile_lanes=2048):
    """Forward pass of customConv2.

    mxu_dtype : dtype of the MXU operands and of the HBM image bands.
        jnp.float32  -> closest to the f32 reference.
        jnp.bfloat16 -> halves HBM band bytes and runs the MXU at native bf16
                        rate (recommended on v5e/v6e/v7x); element-wise math
                        and accumulation stay f32.
    tile_lanes: target lane width per tile (rounded to whole padded-image rows,
        kept a multiple of 128).  Sweep 1024-2048; reduce on v7x for huge K.
    """
    B, C, H, W = img.shape
    kh, kw = kernel_size
    O = weights.shape[0]
    K = C * kh * kw

    out_h = (H - kh + 2 * padding) // stride + 1
    out_w = (W - kw + 2 * padding) // stride + 1

    # Internal compute is stride-1; stride > 1 is an exact output subsample.
    Hp = H + 2 * padding
    Wp = W + 2 * padding
    out_h1 = Hp - kh + 1
    out_w1 = Wp - kw + 1

    wp_pad = _round_up(Wp, 16)                    # => R*wp_pad is a multiple of 128
    R = (max(tile_lanes // wp_pad, 1) // 8) * 8   # output rows per tile
    R = max(8, min(R, _round_up(out_h1, 8)))
    grid_r = -(-out_h1 // R)
    hp_tot = grid_r * R + kh                      # keep every band slice in bounds
    band_h = R + kh
    N = R * wp_pad

    # Pad (conv padding + alignment) and build overlapping row bands:
    # (B, grid_r, C, band_h*wp_pad) with a kh-row halo per band (~1.2x duplication
    # instead of the 9x materialized-im2col inflation).
    xpad = jnp.pad(
        img.astype(jnp.float32),
        ((0, 0), (0, 0),
         (padding, hp_tot - H - padding),
         (padding, wp_pad - W - padding)),
    )
    bands = jnp.stack([xpad[:, :, r * R:r * R + band_h, :] for r in range(grid_r)],
                      axis=1)
    bands = bands.reshape(B, grid_r, C, band_h * wp_pad).astype(mxu_dtype)

    # Stacked coefficient matrix W_hat: (6*O, khat)
    #   row groups:  [f, g1, g2-g1, g3-g2, g4-g3, g5-g4]
    #   col groups:  [x (K) | x^2 (K) | x^3 (K) | bias ("ones" rows) | zero pad]
    w_p = jnp.transpose(weights.astype(jnp.float32), (0, 2, 3, 1)).reshape(O, K)
    id_p = jnp.transpose(identity_kernel.astype(jnp.float32), (0, 2, 3, 1)).reshape(O, K)
    colsum_w = jnp.sum(w_p, axis=1)
    colsum_id = jnp.sum(id_p, axis=1)

    c1 = [_P11 / 75.0, _A1[0]] + [_A1[i + 1] - _A1[i] for i in range(4)]
    c2 = [_P21 / 75.0, _A2[0]] + [_A2[i + 1] - _A2[i] for i in range(4)]
    c3 = [0.0, _A3[0]] + [_A3[i + 1] - _A3[i] for i in range(4)]
    bw = [_P01 / 75.0, _A0[0]] + [_A0[i + 1] - _A0[i] for i in range(4)]
    bid = [0.0, _CID[0]] + [_CID[i + 1] - _CID[i] for i in range(4)]

    khat = _round_up(3 * K + 1, 16)               # pad contraction for MXU/sublanes
    groups = []
    for g in range(6):
        bias_g = bw[g] * colsum_w + bid[g] * colsum_id          # (O,)
        groups.append(jnp.concatenate(
            [c1[g] * w_p, c2[g] * w_p, c3[g] * w_p, bias_g[:, None],
             jnp.zeros((O, khat - 3 * K - 1), jnp.float32)], axis=1))
    w_hat = jnp.concatenate(groups, axis=0).astype(mxu_dtype)   # (6O, khat)

    kernel = _make_kernel(C, kh, kw, wp_pad, R, K, khat, O, mxu_dtype)

    out = pl.pallas_call(
        kernel,
        out_shape=jax.ShapeDtypeStruct((B, O, grid_r * N), jnp.float32),
        grid=(B, grid_r),
        in_specs=[
            pl.BlockSpec((1, 1, C, band_h * wp_pad), lambda b, r: (b, r, 0, 0)),
            pl.BlockSpec((6 * O, khat), lambda b, r: (0, 0)),    # VMEM-resident
        ],
        out_specs=pl.BlockSpec((1, O, N), lambda b, r: (b, 0, r)),
        compiler_params=pltpu.CompilerParams(
            dimension_semantics=("parallel", "parallel")),
    )(bands, w_hat)

    # Un-flatten lanes, drop alignment rows/columns, apply the stride subsample.
    out = out.reshape(B, O, grid_r * R, wp_pad)[:, :, :out_h1, :out_w1]
    if stride > 1:
        out = out[:, :, ::stride, ::stride]
    return out


# ---------------------------------------------------------------------------
# Pure-JAX reference mirroring the PyTorch forward (validation only).
# ---------------------------------------------------------------------------
def _unfold_nchw(img, kernel_size, stride, padding):
    b, c, h, w = img.shape
    kh, kw = kernel_size
    out_h = (h - kh + 2 * padding) // stride + 1
    out_w = (w - kw + 2 * padding) // stride + 1
    if padding > 0:
        img = jnp.pad(img, ((0, 0), (0, 0), (padding, padding), (padding, padding)))
    patches = jnp.stack(
        [img[:, :, i:i + out_h * stride:stride, j:j + out_w * stride:stride]
         for i in range(kh) for j in range(kw)],
        axis=2,
    )
    return patches.reshape(b, c * kh * kw, out_h * out_w), out_h, out_w


def _reference_forward(img, weights, identity_kernel, kernel_size, stride, padding=0):
    b = img.shape[0]
    O = weights.shape[0]
    x_kl, out_h, out_w = _unfold_nchw(img, kernel_size, stride, padding)
    x = x_kl.transpose(0, 2, 1)
    idw = identity_kernel.reshape(O, -1)
    w = weights.reshape(O, -1)
    x2, x3 = x * x, x * x * x
    f = (jnp.zeros_like(x) @ idw.T
         + (-0.000287 + 0.266 * x - 0.1097 * x2) @ w.T) / 75.0

    def g(c_id, a0, a1, a2, a3):
        return (c_id * jnp.ones_like(x)) @ idw.T + (a0 + a1 * x + a2 * x2 + a3 * x3) @ w.T

    g1 = g(0.11 / 75, 0.001309, 0.00619, -0.009, 0.001383)
    g2 = g(0.179 / 75, -0.0025, 0.00303, -0.00484, 0.0175)
    g3 = g(0.238 / 75, -0.000954, 0.00187, 0.001877, 0.01502)
    g4 = g(0.388 / 75, -0.00734, 0.001117, 0.00752, 0.009)
    g5 = g(0.507 / 75, -0.01017, 0.000426, 0.00837, 0.00413)
    sig = lambda z: 1.0 / (1.0 + jnp.exp(-10.0 * z))
    s1 = sig(0.15 - f)
    s2 = sig(f - 0.15) + sig(0.23 - f) - 1.0
    s3 = sig(f - 0.23) + sig(0.32 - f) - 1.0
    s4 = sig(f - 0.32) + sig(0.39 - f) - 1.0
    s5 = sig(f - 0.39)
    out = s1 * g1 + s2 * g2 + s3 * g3 + s4 * g4 + s5 * g5
    return out.transpose(0, 2, 1).reshape(b, O, out_h, out_w)


if __name__ == "__main__":
    B, C_in, H, W = 2, 4, 16, 16
    C_out = 8
    kernel_size = (3, 3)

    key = jax.random.PRNGKey(0)
    k_img, k_w = jax.random.split(key)
    img = jax.random.normal(k_img, (B, C_in, H, W), dtype=jnp.float32)
    weights = 0.8 * jax.random.normal(k_w, (C_out, C_in, *kernel_size), dtype=jnp.float32)
    identity_kernel = jnp.ones((C_out, C_in, *kernel_size), dtype=jnp.float32)

    # --- stride 1, no padding (f32 MXU operands) -------------------------------
    ref = _reference_forward(img, weights, identity_kernel, kernel_size, 1, 0)
    out = custom_conv2_forward(img, weights, identity_kernel, kernel_size, 1, 0)
    out = jax.block_until_ready(out)
    assert out.shape == ref.shape == (B, C_out, 14, 14)
    assert jnp.allclose(out, ref, rtol=5e-3, atol=5e-3), "f32 kernel mismatch"

    # --- stride 2, padding 1 (exercises padding + host-side subsample) ---------
    ref2 = _reference_forward(img, weights, identity_kernel, kernel_size, 2, 1)
    out2 = custom_conv2_forward(img, weights, identity_kernel, kernel_size, 2, 1)
    out2 = jax.block_until_ready(out2)
    assert out2.shape == ref2.shape == (B, C_out, 8, 8)
    assert jnp.allclose(out2, ref2, rtol=5e-3, atol=5e-3), "stride-2 kernel mismatch"

    # --- bf16 MXU operands (recommended on v5e/v6e/v7x), f32 element-wise ------
    out_bf16 = custom_conv2_forward(img, weights, identity_kernel, kernel_size, 1, 0,
                                    mxu_dtype=jnp.bfloat16)
    out_bf16 = jax.block_until_ready(out_bf16)
    assert jnp.allclose(out_bf16, ref, rtol=1e-1, atol=1e-1), "bf16 kernel mismatch"

    print("KERNEL_OK")
</pallas_src>

<mosaic_0001>
module attributes {stable_mosaic.version = 11 : i64} {
  func.func @kernel(%arg0: i32, %arg1: i32, %arg2: memref<1x1x4x304xf32, #tpu.memory_space<vmem>>, %arg3: memref<48x112xf32, #tpu.memory_space<vmem>>, %arg4: memref<1x8x256xf32, #tpu.memory_space<vmem>>) attributes {dimension_semantics = [#tpu.dimension_semantics<parallel>, #tpu.dimension_semantics<parallel>], iteration_bounds = array<i64: 2, 1>, scalar_prefetch = 0 : i64, scratch_operands = 0 : i64, tpu.core_type = #tpu.core_type<tc>, window_params = [{transform_indices = @transform_0, window_bounds = array<i64: 1, 1, 4, 304>}, {pipeline_mode = #tpu.pipeline_mode<synchronous>, transform_indices = @transform_1, window_bounds = array<i64: 48, 112>}, {transform_indices = @transform_2, window_bounds = array<i64: 1, 8, 256>}]} {
    %c0 = arith.constant 0 : index
    %c0_0 = arith.constant 0 : index
    %c0_1 = arith.constant 0 : index
    %c0_2 = arith.constant 0 : index
    %0 = vector.load %arg2[%c0, %c0_0, %c0_1, %c0_2] : memref<1x1x4x304xf32, #tpu.memory_space<vmem>>, vector<1x1x4x256xf32>
    %1 = vector.shape_cast %0 : vector<1x1x4x256xf32> to vector<4x256xf32>
    %c0_3 = arith.constant 0 : index
    %c0_4 = arith.constant 0 : index
    %c0_5 = arith.constant 0 : index
    %c1 = arith.constant 1 : index
    %2 = vector.load %arg2[%c0_3, %c0_4, %c0_5, %c1] : memref<1x1x4x304xf32, #tpu.memory_space<vmem>>, vector<1x1x4x256xf32>
    %3 = vector.shape_cast %2 : vector<1x1x4x256xf32> to vector<4x256xf32>
    %c0_6 = arith.constant 0 : index
    %c0_7 = arith.constant 0 : index
    %c0_8 = arith.constant 0 : index
    %c2 = arith.constant 2 : index
    %4 = vector.load %arg2[%c0_6, %c0_7, %c0_8, %c2] : memref<1x1x4x304xf32, #tpu.memory_space<vmem>>, vector<1x1x4x256xf32>
    %5 = vector.shape_cast %4 : vector<1x1x4x256xf32> to vector<4x256xf32>
    %c0_9 = arith.constant 0 : index
    %c0_10 = arith.constant 0 : index
    %c0_11 = arith.constant 0 : index
    %c16 = arith.constant 16 : index
    %6 = vector.load %arg2[%c0_9, %c0_10, %c0_11, %c16] : memref<1x1x4x304xf32, #tpu.memory_space<vmem>>, vector<1x1x4x256xf32>
    %7 = vector.shape_cast %6 : vector<1x1x4x256xf32> to vector<4x256xf32>
    %c0_12 = arith.constant 0 : index
    %c0_13 = arith.constant 0 : index
    %c0_14 = arith.constant 0 : index
    %c17 = arith.constant 17 : index
    %8 = vector.load %arg2[%c0_12, %c0_13, %c0_14, %c17] : memref<1x1x4x304xf32, #tpu.memory_space<vmem>>, vector<1x1x4x256xf32>
    %9 = vector.shape_cast %8 : vector<1x1x4x256xf32> to vector<4x256xf32>
    %c0_15 = arith.constant 0 : index
    %c0_16 = arith.constant 0 : index
    %c0_17 = arith.constant 0 : index
    %c18 = arith.constant 18 : index
    %10 = vector.load %arg2[%c0_15, %c0_16, %c0_17, %c18] : memref<1x1x4x304xf32, #tpu.memory_space<vmem>>, vector<1x1x4x256xf32>
    %11 = vector.shape_cast %10 : vector<1x1x4x256xf32> to vector<4x256xf32>
    %c0_18 = arith.constant 0 : index
    %c0_19 = arith.constant 0 : index
    %c0_20 = arith.constant 0 : index
    %c32 = arith.constant 32 : index
    %12 = vector.load %arg2[%c0_18, %c0_19, %c0_20, %c32] : memref<1x1x4x304xf32, #tpu.memory_space<vmem>>, vector<1x1x4x256xf32>
    %13 = vector.shape_cast %12 : vector<1x1x4x256xf32> to vector<4x256xf32>
    %c0_21 = arith.constant 0 : index
    %c0_22 = arith.constant 0 : index
    %c0_23 = arith.constant 0 : index
    %c33 = arith.constant 33 : index
    %14 = vector.load %arg2[%c0_21, %c0_22, %c0_23, %c33] : memref<1x1x4x304xf32, #tpu.memory_space<vmem>>, vector<1x1x4x256xf32>
    %15 = vector.shape_cast %14 : vector<1x1x4x256xf32> to vector<4x256xf32>
    %c0_24 = arith.constant 0 : index
    %c0_25 = arith.constant 0 : index
    %c0_26 = arith.constant 0 : index
    %c34 = arith.constant 34 : index
    %16 = vector.load %arg2[%c0_24, %c0_25, %c0_26, %c34] : memref<1x1x4x304xf32, #tpu.memory_space<vmem>>, vector<1x1x4x256xf32>
    %17 = vector.shape_cast %16 : vector<1x1x4x256xf32> to vector<4x256xf32>
    %18 = tpu.concatenate %1, %3, %5, %7, %9, %11, %13, %15, %17 in 0 : vector<4x256xf32>, vector<4x256xf32>, vector<4x256xf32>, vector<4x256xf32>, vector<4x256xf32>, vector<4x256xf32>, vector<4x256xf32>, vector<4x256xf32>, vector<4x256xf32> -> vector<36x256xf32>
    %19 = arith.mulf %18, %18 : vector<36x256xf32>
    %20 = arith.mulf %19, %18 : vector<36x256xf32>
    %cst = arith.constant 1.000000e+00 : f32
    %21 = vector.broadcast %cst : f32 to vector<4x256xf32>
    %22 = tpu.concatenate %18, %19, %20, %21 in 0 : vector<36x256xf32>, vector<36x256xf32>, vector<36x256xf32>, vector<4x256xf32> -> vector<112x256xf32>
    %c0_27 = arith.constant 0 : index
    %c0_28 = arith.constant 0 : index
    %23 = vector.load %arg3[%c0_27, %c0_28] : memref<48x112xf32, #tpu.memory_space<vmem>>, vector<48x112xf32>
    %cst_29 = arith.constant dense<0.000000e+00> : vector<48x256xf32>
    %24 = tpu.matmul %23, %22, %cst_29 {dimension_numbers = #tpu.dot_dimension_numbers<[1], [0], [0], [1], [0, 0, 1, 1], [], []>} : vector<48x112xf32>, vector<112x256xf32>, vector<48x256xf32> -> vector<48x256xf32>
    %25 = vector.extract_strided_slice %24 {offsets = [0, 0], sizes = [8, 256], strides = [1, 1]} : vector<48x256xf32> to vector<8x256xf32>
    %26 = vector.extract_strided_slice %24 {offsets = [8, 0], sizes = [8, 256], strides = [1, 1]} : vector<48x256xf32> to vector<8x256xf32>
    %cst_30 = arith.constant -1.000000e+01 : f32
    %27 = vector.broadcast %cst_30 : f32 to vector<8x256xf32>
    %28 = arith.mulf %27, %25 : vector<8x256xf32>
    %cst_31 = arith.constant 6.000000e+01 : f32
    %29 = vector.broadcast %cst_31 : f32 to vector<8x256xf32>
    %30 = arith.minimumf %28, %29 : vector<8x256xf32>
    %31 = math.exp %30 : vector<8x256xf32>
    %cst_32 = arith.constant 4.48168898 : f32
    %32 = vector.broadcast %cst_32 : f32 to vector<8x256xf32>
    %33 = arith.mulf %32, %31 : vector<8x256xf32>
    %cst_33 = arith.constant 1.000000e+00 : f32
    %34 = vector.broadcast %cst_33 : f32 to vector<8x256xf32>
    %35 = arith.addf %34, %33 : vector<8x256xf32>
    %36 = tpu.reciprocal %35 {approx = true} : vector<8x256xf32> -> vector<8x256xf32>
    %37 = vector.extract_strided_slice %24 {offsets = [16, 0], sizes = [8, 256], strides = [1, 1]} : vector<48x256xf32> to vector<8x256xf32>
    %38 = arith.mulf %36, %37 : vector<8x256xf32>
    %39 = arith.addf %26, %38 : vector<8x256xf32>
    %cst_34 = arith.constant 9.97418212 : f32
    %40 = vector.broadcast %cst_34 : f32 to vector<8x256xf32>
    %41 = arith.mulf %40, %31 : vector<8x256xf32>
    %cst_35 = arith.constant 1.000000e+00 : f32
    %42 = vector.broadcast %cst_35 : f32 to vector<8x256xf32>
    %43 = arith.addf %42, %41 : vector<8x256xf32>
    %44 = tpu.reciprocal %43 {approx = true} : vector<8x256xf32> -> vector<8x256xf32>
    %45 = vector.extract_strided_slice %24 {offsets = [24, 0], sizes = [8, 256], strides = [1, 1]} : vector<48x256xf32> to vector<8x256xf32>
    %46 = arith.mulf %44, %45 : vector<8x256xf32>
    %47 = arith.addf %39, %46 : vector<8x256xf32>
    %cst_36 = arith.constant 24.5325298 : f32
    %48 = vector.broadcast %cst_36 : f32 to vector<8x256xf32>
    %49 = arith.mulf %48, %31 : vector<8x256xf32>
    %cst_37 = arith.constant 1.000000e+00 : f32
    %50 = vector.broadcast %cst_37 : f32 to vector<8x256xf32>
    %51 = arith.addf %50, %49 : vector<8x256xf32>
    %52 = tpu.reciprocal %51 {approx = true} : vector<8x256xf32> -> vector<8x256xf32>
    %53 = vector.extract_strided_slice %24 {offsets = [32, 0], sizes = [8, 256], strides = [1, 1]} : vector<48x256xf32> to vector<8x256xf32>
    %54 = arith.mulf %52, %53 : vector<8x256xf32>
    %55 = arith.addf %47, %54 : vector<8x256xf32>
    %cst_38 = arith.constant 49.4024506 : f32
    %56 = vector.broadcast %cst_38 : f32 to vector<8x256xf32>
    %57 = arith.mulf %56, %31 : vector<8x256xf32>
    %cst_39 = arith.constant 1.000000e+00 : f32
    %58 = vector.broadcast %cst_39 : f32 to vector<8x256xf32>
    %59 = arith.addf %58, %57 : vector<8x256xf32>
    %60 = tpu.reciprocal %59 {approx = true} : vector<8x256xf32> -> vector<8x256xf32>
    %61 = vector.extract_strided_slice %24 {offsets = [40, 0], sizes = [8, 256], strides = [1, 1]} : vector<48x256xf32> to vector<8x256xf32>
    %62 = arith.mulf %60, %61 : vector<8x256xf32>
    %63 = arith.addf %55, %62 : vector<8x256xf32>
    %c0_40 = arith.constant 0 : index
    %c0_41 = arith.constant 0 : index
    %c0_42 = arith.constant 0 : index
    %64 = vector.load %arg4[%c0_40, %c0_41, %c0_42] : memref<1x8x256xf32, #tpu.memory_space<vmem>>, vector<1x8x256xf32>
    %65 = vector.shape_cast %64 : vector<1x8x256xf32> to vector<8x256xf32>
    %66 = vector.shape_cast %63 : vector<8x256xf32> to vector<1x8x256xf32>
    tpu.vector_store %arg4[%c0_40, %c0_41, %c0_42], %66 {strides = array<i32>} : memref<1x8x256xf32, #tpu.memory_space<vmem>>, vector<1x8x256xf32>,
    return
  }
  func.func @transform_0(%arg0: i32, %arg1: i32) -> (i32, i32, i32, i32) {
    %c0_i32 = arith.constant 0 : i32
    %c0_i32_0 = arith.constant 0 : i32
    %c0_i32_1 = arith.constant 0 : i32
    return %arg0, %arg1, %c0_i32, %c0_i32_0 : i32, i32, i32, i32
  }
  func.func @transform_1(%arg0: i32, %arg1: i32) -> (i32, i32) {
    %c0_i32 = arith.constant 0 : i32
    %c0_i32_0 = arith.constant 0 : i32
    %c0_i32_1 = arith.constant 0 : i32
    return %c0_i32, %c0_i32_0 : i32, i32
  }
  func.func @transform_2(%arg0: i32, %arg1: i32) -> (i32, i32, i32) {
    %c0_i32 = arith.constant 0 : i32
    %c0_i32_0 = arith.constant 0 : i32
    return %arg0, %c0_i32, %arg1 : i32, i32, i32
  }
}

</mosaic_0001>

<bundles_post_ra>
// kernel: tpu_custom_call.1
= control target key start
LH: loop header
LB: loop body
LE: loop exit
PB: predicated region body
PF: predicated region fallthrough
CT: control target
= control target key end

     0   :  { %7 = vsyncpa [#allocation3], 0  ;;  %s1296_s0 = inlined_call_operand.hbm [shape: f32[2,1,4,304], index: 0, kind: input, shape index: {}]   ;;  %s1297_s1 = inlined_call_operand.hbm [shape: f32[48,112], index: 1, kind: input, shape index: {}]   ;;  %s1298_s2 = inlined_call_operand.hbm [shape: f32[2,8,256], index: 2, kind: output, shape index: {}]  }
   0x1   :  { %9 = vsyncpa [#allocation3 + $0x1], 0 }
   0x2   :  { %10 = vsyncpa [#allocation6], 0 }
   0x3   :  { %11 = vsyncpa [#allocation4], 0 }
   0x4   :  { %13 = vsyncpa [#allocation4 + $0x1], 0  ;;  %s1010_s9 = smov 0   ;;  %s1012_s10 = smov 0  }
   0x5   :  { %s1014_s11 = smov 0   ;;  %s1016_s12 = smov 0  }
   0x6   :  { %s1018_s13 = smov 0   ;;  %s1020_s14 = smov 0  }
   0x7 LB: > { %s675_s15 = sadd.s32 4294967295, %s982_s14   ;;  %p677_p0 = scmp.ge.s32.totalorder %s982_s14, 1  ;;  %s982_s14 = sphi %s1020_s14, %s19_s14   ;;  %s978_s13 = sphi %s1018_s13, %s1309_s13   ;;  %s974_s12 = sphi %s1016_s12, %s1308_s12   ;;  %s970_s11 = sphi %s1014_s11, %s1307_s11   ;;  %s966_s10 = sphi %s1012_s10, %s1306_s10   ;;  %s962_s9 = sphi %s1010_s9, %s1305_s9  }
   0x8   : > { %p1042_p1 = scmp.eq.s32.totalorder %s675_s15, 0  ;;  %p113_p2 = scmp.lt.s32.totalorder %s982_s14, 3 }
   0x9   : > { %s124_s19 = sshll.u32 %s1297_s1, 4  ;;  %s984_s21 = smov [#allocation5]   ;;  %s125_s19 = int_to_ptr.hbm [resolvable:$true] %s124_s19 }
   0xa   : > { %p1050_p3 = pnand %p677_p0, %p113_p2  ;;  %s126_s22 = sshll.u32 %s984_s21, 4  ;;  %s127_s22 = int_to_ptr.vmem [resolvable:$true] %s126_s22 }
   0xb   : > { %p679_p6 = scmp.ge.s32.totalorder %s982_s14, 2  ;;  %s985_s23 = smov 128  }
   0xc   : > { %p741_p4 = pneg %p1050_p3  ;;  %s986_s24 = smov 8  }
   0xd   : > { %s676_s25 = sadd.s32 4294967294, %s982_s14   ;;  %s31_s26 = sadd.s32 1, %s978_s13 }
   0xe   : > { %p742_p5 = pnand %p741_p4, %p1042_p1  ;;  %s40_s27 = sadd.s32 1, %s970_s11 }
   0xf   : > { %p33_p7 = scmp.ge.s32.totalorder %s31_s26, 2  ;;  %p47_p8 = scmp.ne.s32.totalorder %s970_s11, %s966_s10 }
  0x10   : > { %744 = dma.hbm_to_vmem [thread:$0]  (!%p742_p5), %s125_s19, 768, %s127_s22, [#allocation6], %s985_s23, %s985_s23, %s986_s24  }
  0x11   : > { %p48_p9 = scmp.eq.s32.totalorder %s982_s14, 0  ;;  %p53_p10 = scmp.ne.s32.totalorder %s966_s10, %s962_s9 }
  0x12   : > { %s1311_s26 = smov (%p33_p7, %s31_s26), 0  ;;  %p100_p13 = scmp.eq.s32.totalorder %s675_s15, 1 }
  0x13   : > { %p1069_p11 = por %p48_p9, %p47_p8  ;;  %p1075_p12 = por %p1042_p1, %p53_p10 }
  0x14   : > { %s35_s30 = ssub.s32 %s978_s13, %s1311_s26  ;;  %p106_p2 = scmp.eq.s32.totalorder %s676_s25, 1 }
  0x15   : > { %p38_p0 = scmp.eq.s32.totalorder %s35_s30, 0  ;;  %p1081_p4 = por %p100_p13, %p47_p8 }
  0x16   : > { %p754_p5 = scmp.lt.s32.totalorder %s982_s14, 2  ;;  %p1089_p7 = por %p106_p2, %p53_p10 }
  0x17   : > { %s1087_s4 = scalar_select %p38_p0, %s970_s11, %s40_s27  }
  0x18   : > { %s140_s6 = sand.u32 1, %s970_s11   ;;  %s731_s8 = smul.u32 12, %s978_s13 }
  0x19   : > { %s730_s7 = smul.u32 12, %s140_s6  ;;  %p746_p9 = pnand %p754_p5, %p1069_p11 }
  0x1a   : > { %s151_s18 = scalar_lea.hbm %s1296_s0, %s731_s8  ;;  %s141_s23 = scalar_lea.sflag [#allocation3], %s140_s6 }
  0x1b   : > { %s144_s19 = scalar_lea.vmem [#allocation2], %s730_s7  ;;  %s153_s22 = sshll.u32 %s151_s18, 4  ;;  %s154_s22 = int_to_ptr.hbm [resolvable:$true] %s153_s22 }
  0x1c   : > { %s155_s21 = sshll.u32 %s144_s19, 4  ;;  %164 = sbr.rel (%p1050_p3) target bundleno = 434 (0x1b2), region = 28  ;;  %s156_s21 = int_to_ptr.vmem [resolvable:$true] %s155_s21 }
  0x1d   : > { %748 = dma.hbm_to_vmem [thread:$0]  (!%p746_p9), %s154_s22, 192, %s156_s21, %s141_s23  }
  0x1e   : > { %s1103_s24 = sand.u32 (!%p1050_p3), 1, %s966_s10  }
  0x1f   : > { %s732_s25 = smul.u32 (!%p1050_p3), 12, %s1103_s24  ;;  %s167_s27 = scalar_lea.sflag (!%p1050_p3), [#allocation3], %s1103_s24 }
  0x21   : > { %s170_s28 = scalar_lea.vmem [#allocation2], %s732_s25 }
  0x22   : > { %949 = dma.done.wait (%p1075_p12), %s167_s27, 192  }
  0x23   : > { %951 = vsyncadd (%p1075_p12), %s167_s27, 4294967104 }
  0x24   : > { %953 = dma.done.wait (%p1042_p1), [#allocation6], 768  }
  0x25   : > { %955 = vsyncadd (%p1042_p1), [#allocation6], 4294966528  ;;  %v1115_v0 = vld [vmem:[%s170_s28] sm:$0xff]  ;;  %v199_v1 = vld [vmem:[%s170_s28 + $0x8] sm:$0xf]  ;;  %s987_s16 = smov 126  }
  0x26   : > { %201 = vst [vmem:[#allocation1] ss:$2 sm:$0xff] %v1115_v0  ;;  %s988_s20 = smov 112   ;;  %s989_s29 = smov 111   ;;  %vm325_vm0 = vcmask 777216   ;;  %vm237_vm1 = vcmask 1031168  }
  0x27   : > { %210 = vst [vmem:[#allocation1 + $0x11] ss:$2 sm:$0xff] %v199_v1  ;;  %s990_s30 = smov 110   ;;  %s991_s6 = smov 96   ;;  %vm272_vm2 = vcmask 908288   ;;  %vm290_vm3 = vcmask 900096  }
  0x28   : > { %s992_s7 = smov 95   ;;  %s993_s8 = smov 94   ;;  %vm307_vm4 = vcmask 785408   ;;  %vm255_vm5 = vcmask 916480   ;;  %vm347_vm6 = vcmask 1043456   ;;  %vm342_vm7 = vcmask 769024  }
  0x29   : > { %s994_s17 = smov 127   ;;  %vm220_vm8 = vcmask 1039360   ;;  %s683_s15 = sshll.u32 %s1103_s24, 4 }
  0x2a   : > { %s701_s18 = sshll.u32 %s974_s12, 4  ;;  %s196_s12 = scalar_lea.vmem [#allocation7], %s683_s15 }
  0x2b   : > { %s576_s22 = scalar_lea.hbm %s1298_s2, %s701_s18  ;;  %s578_s23 = sshll.u32 %s196_s12, 4  ;;  %s579_s23 = int_to_ptr.vmem [resolvable:$true] %s578_s23 }
  0x2c   : > { %s580_s25 = sshll.u32 %s576_s22, 4  ;;  %s563_s27 = scalar_lea.sflag [#allocation4], %s1103_s24  ;;  %s581_s25 = int_to_ptr.hbm [resolvable:$true] %s580_s25 }
  0x2d   : > { %v1118_v2 = vld.sshfl [vmem:[#allocation1] sm:$0xff pattern:$0x75316420]  ;;  %v1120_v3 = vld.sshfl [vmem:[#allocation1 + $0x8] sm:$0xff pattern:$0x75316420] }
  0x2e   : > { %208 = vst [vmem:[#allocation1 + $0x1] ss:$2 sm:$0xff] %v1115_v0  ;;  %v1123_v4 = vld.sshfl [vmem:[#allocation1 + $0x10] sm:$0xff pattern:$0x75316420]  ;;  %s910_s28 = sshra.s32 %s581_s25, 4  ;;  %s911_s28 = int_to_ptr.hbm [resolvable:$true] %s910_s28 }
  0x2f   : > { %227 = vst [vmem:[#allocation1 + $0x10] ss:$2 sm:$0xff] %v199_v1  ;;  %p917_p10 = scmp.lt.s32.totalorder %s911_s28, %s1298_s2 }
  0x35   : > { %v1125_v5 = vld.sshfl [vmem:[#allocation1] sm:$0xff pattern:$0x75316420]  ;;  %v1127_v6 = vld.sshfl [vmem:[#allocation1 + $0x8] sm:$0xff pattern:$0x75316420] }
  0x36   : > { %225 = vst [vmem:[#allocation1] ss:$2 sm:$0xff] %v1115_v0  ;;  %v230_v7 = vld.sshfl [vmem:[#allocation1 + $0x10] sm:$0xff pattern:$0x75316420] }
  0x37   : > { %235 = vrot.lane.b32.xlu2 %v230_v7, %s987_s16  ;;  %245 = vst [vmem:[#allocation1 + $0x11] ss:$2 sm:$0xff] %v199_v1 }
  0x3d   : > { %v229_v8 = vld.sshfl [vmem:[#allocation1 + $0x8] sm:$0xff pattern:$0x75316420]  ;;  %v228_v9 = vld.sshfl [vmem:[#allocation1] sm:$0xff pattern:$0x75316420] }
  0x3e   : > { %233 = vrot.lane.b32.xlu1 %v229_v8, %s987_s16  ;;  %231 = vrot.lane.b32.xlu0 %v228_v9, %s987_s16  ;;  %243 = vst [vmem:[#allocation1 + $0x1] ss:$2 sm:$0xff] %v1115_v0  ;;  %v248_v10 = vld.sshfl [vmem:[#allocation1 + $0x10] sm:$0xff pattern:$0x75316420]  ;;  %s912_s16 = scalar_lea.hbm %s911_s28, 16 }
  0x3f   : > { %253 = vrot.lane.b32.xlu2 %v248_v10, %s988_s20  ;;  %262 = vst [vmem:[#allocation1 + $0x10] ss:$2 sm:$0xff] %v199_v1  ;;  %p913_p1 = scmp.ne.s32.totalorder %s911_s28, %s912_s16 }
  0x41   : > { %p914_p3 = pnand %p913_p1, %p1081_p4 }
  0x43   : > { %p915_p8 = pneg %p914_p3 }
  0x45   : > { %v247_v11 = vld.sshfl [vmem:[#allocation1 + $0x8] sm:$0xff pattern:$0x75316420]  ;;  %v246_v12 = vld.sshfl [vmem:[#allocation1] sm:$0xff pattern:$0x75316420] }
  0x46   : > { %251 = vrot.lane.b32.xlu1 %v247_v11, %s988_s20  ;;  %249 = vrot.lane.b32.xlu0 %v246_v12, %s988_s20  ;;  %260 = vst [vmem:[#allocation1] ss:$2 sm:$0xff] %v1115_v0  ;;  %v265_v13 = vld.sshfl [vmem:[#allocation1 + $0x10] sm:$0xff pattern:$0x75316420] }
  0x47   : > { %270 = vrot.lane.b32.xlu2 %v265_v13, %s989_s29  ;;  %280 = vst [vmem:[#allocation1 + $0x11] ss:$2 sm:$0xff] %v199_v1 }
  0x4d   : > { %v264_v14 = vld.sshfl [vmem:[#allocation1 + $0x8] sm:$0xff pattern:$0x75316420]  ;;  %v263_v15 = vld.sshfl [vmem:[#allocation1] sm:$0xff pattern:$0x75316420] }
  0x4e   : > { %268 = vrot.lane.b32.xlu1 %v264_v14, %s989_s29  ;;  %266 = vrot.lane.b32.xlu0 %v263_v15, %s989_s29  ;;  %278 = vst [vmem:[#allocation1 + $0x1] ss:$2 sm:$0xff] %v1115_v0  ;;  %v283_v16 = vld.sshfl [vmem:[#allocation1 + $0x10] sm:$0xff pattern:$0x75316420] }
  0x4f   : > { %297 = vst [vmem:[#allocation1 + $0x10] ss:$2 sm:$0xff] %v199_v1  ;;  %288 = vrot.lane.b32.xlu2 %v283_v16, %s990_s30 }
  0x55   : > { %v282_v17 = vld.sshfl [vmem:[#allocation1 + $0x8] sm:$0xff pattern:$0x75316420]  ;;  %v281_v18 = vld.sshfl [vmem:[#allocation1] sm:$0xff pattern:$0x75316420] }
  0x56   : > { %286 = vrot.lane.b32.xlu1 %v282_v17, %s990_s30  ;;  %284 = vrot.lane.b32.xlu0 %v281_v18, %s990_s30  ;;  %295 = vst [vmem:[#allocation1] ss:$2 sm:$0xff] %v1115_v0  ;;  %v300_v19 = vld.sshfl [vmem:[#allocation1 + $0x10] sm:$0xff pattern:$0x75316420]  ;;  %s916_s30 = scalar_lea.hbm %s1298_s2, 32 }
  0x57   : > { %315 = vst [vmem:[#allocation1 + $0x11] ss:$2 sm:$0xff] %v199_v1  ;;  %305 = vrot.lane.b32.xlu2 %v300_v19, %s991_s6  ;;  %p918_p11 = scmp.lt.s32.totalorder %s916_s30, %s912_s16 }
  0x59   : > { %p919_p12 = por %p918_p11, %p917_p10 }
  0x5b   : > { %p920_p13 = pnand %p919_p12, %p915_p8 }
  0x5d   : > { %v298_v20 = vld.sshfl [vmem:[#allocation1] sm:$0xff pattern:$0x75316420]  ;;  %v299_v21 = vld.sshfl [vmem:[#allocation1 + $0x8] sm:$0xff pattern:$0x75316420] }
  0x5e   : > { %301 = vrot.lane.b32.xlu1 %v298_v20, %s991_s6  ;;  %313 = vst [vmem:[#allocation1 + $0x1] ss:$2 sm:$0xff] %v1115_v0  ;;  %v318_v22 = vld.sshfl [vmem:[#allocation1 + $0x10] sm:$0xff pattern:$0x75316420] }
  0x5f   : > { %332 = vst [vmem:[#allocation1 + $0x10] ss:$2 sm:$0xff] %v199_v1  ;;  %303 = vrot.lane.b32.xlu2 %v299_v21, %s991_s6 }
  0x65   : > { %v316_v23 = vld.sshfl [vmem:[#allocation1] sm:$0xff pattern:$0x75316420]  ;;  %v317_v24 = vld.sshfl [vmem:[#allocation1 + $0x8] sm:$0xff pattern:$0x75316420] }
  0x66   : > { %v335_v25 = vld.sshfl [vmem:[#allocation1 + $0x10] sm:$0xff pattern:$0x75316420]  ;;  %319 = vrot.lane.b32.xlu0 %v316_v23, %s992_s7  ;;  %330 = vst [vmem:[#allocation1] ss:$2 sm:$0xff] %v1115_v0 }
  0x67   : > { %340 = vrot.lane.b32.xlu1 %v335_v25, %s993_s8  ;;  %323 = vrot.lane.b32.xlu2 %v318_v22, %s992_s7 }
  0x6d   : > { %v333_v26 = vld.sshfl [vmem:[#allocation1] sm:$0xff pattern:$0x75316420]  ;;  %v334_v27 = vld.sshfl [vmem:[#allocation1 + $0x8] sm:$0xff pattern:$0x75316420] }
  0x6e   : > { %336 = vrot.lane.b32.xlu0 %v333_v26, %s993_s8 }
  0x6f   : > { %321 = vrot.lane.b32.xlu1 %v317_v24, %s992_s7  ;;  %218 = vrot.lane.b32.xlu2 %v1123_v4, %s994_s17 }
  0x76   : > { %338 = vrot.lane.b32.xlu0 %v334_v27, %s993_s8 }
  0x77   : > { %216 = vrot.lane.b32.xlu1 %v1127_v6, %s994_s17 }
  0x7e   : > { %214 = vrot.lane.b32.xlu0 %v1125_v5, %s994_s17 }
  0x91   : > { %v236_v28 = vpop.permute.xlu2 %235 }
  0x99   : > { %v254_v29 = vpop.permute.xlu2 %253 }
  0xa1   : > { %v271_v33 = vpop.permute.xlu2 %270 }
  0xa9   : > { %v289_v36 = vpop.permute.xlu2 %288 }
  0xb0   : > { %v234_v30 = vpop.permute.xlu1 %233  ;;  %v232_v31 = vpop.permute.xlu0 %231 }
  0xb1   : > { %v306_v39 = vpop.permute.xlu2 %305  ;;  %v239_v49 = vsel %vm237_vm1, %v234_v30, %v236_v28  ;;  %v238_v51 = vsel %vm237_vm1, %v232_v31, %v234_v30 }
  0xb8   : > { %v252_v32 = vpop.permute.xlu1 %251  ;;  %v250_v34 = vpop.permute.xlu0 %249 }
  0xb9   : > { %v304_v42 = vpop.permute.xlu2 %303  ;;  %v256_v60 = vsel %vm255_vm5, %v250_v34, %v252_v32  ;;  %v257_v0 = vsel %vm255_vm5, %v252_v32, %v254_v29 }
  0xba   : > { %v309_v57 = vsel %vm307_vm4, %v304_v42, %v306_v39  ;;  %v1164_v10 = vsel %vm347_vm6, %v238_v51, %v256_v60  ;;  %v1171_v14 = vsel %vm347_vm6, %v239_v49, %v257_v0 }
  0xbb   : > { %v1187_v21 = vmul.f32 %v1164_v10, %v1164_v10  ;;  %v359_v24 = vmul.f32 %v1171_v14, %v1171_v14 }
  0xbd   : > { %v369_v31 = vmul.f32 %v359_v24, %v1171_v14 }
  0xc0   : > { %v269_v35 = vpop.permute.xlu1 %268  ;;  %v267_v37 = vpop.permute.xlu0 %266 }
  0xc1   : > { %v324_v46 = vpop.permute.xlu2 %323  ;;  %v273_v52 = vsel %vm272_vm2, %v267_v37, %v269_v35  ;;  %v274_v55 = vsel %vm272_vm2, %v269_v35, %v271_v33 }
  0xc8   : > { %v287_v38 = vpop.permute.xlu1 %286  ;;  %v285_v40 = vpop.permute.xlu0 %284 }
  0xc9   : > { %v291_v53 = vsel %vm290_vm3, %v285_v40, %v287_v38  ;;  %v292_v56 = vsel %vm290_vm3, %v287_v38, %v289_v36  ;;  %v219_v7 = vpop.permute.xlu2 %218 }
  0xca   : > { %v1152_v1 = vsel %vm347_vm6, %v273_v52, %v291_v53  ;;  %v1159_v6 = vsel %vm347_vm6, %v274_v55, %v292_v56  ;;  %v421_v55 = vld [vmem:[#allocation5 + $0x18] sm:$0xff]  ;;  %v419_v56 = vld [vmem:[#allocation5 + $0x8] sm:$0xff] }
  0xcb   : > { %v1175_v15 = vmul.f32 %v1152_v1, %v1152_v1  ;;  %v1182_v19 = vmul.f32 %v1159_v6, %v1159_v6 }
  0xcd   : > { %v370_v27 = vmul.f32 %v1175_v15, %v1152_v1  ;;  %v371_v29 = vmul.f32 %v1182_v19, %v1159_v6  ;;  %v392_v39 = vrot.slane %v1175_v15, 4 }
  0xd0   : > { %v302_v41 = vpop.permute.xlu1 %301 }
  0xd1   : > { %v308_v54 = vsel %vm307_vm4, %v302_v41, %v304_v42  ;;  %v394_v41 = vrot.slane %v1182_v19, 4 }
  0xd8   : > { %v320_v43 = vpop.permute.xlu0 %319 }
  0xd9   : > { %v341_v44 = vpop.permute.xlu1 %340 }
  0xe0   : > { %v337_v45 = vpop.permute.xlu0 %336 }
  0xe1   : > { %v322_v47 = vpop.permute.xlu1 %321 }
  0xe2   : > { %v326_v48 = vsel %vm325_vm0, %v320_v43, %v322_v47  ;;  %v327_v50 = vsel %vm325_vm0, %v322_v47, %v324_v46  ;;  %v388_v43 = vrot.slane %v1187_v21, 4  ;;  %v390_v46 = vrot.slane %v359_v24, 4 }
  0xe3   : > { %v1140_v58 = vsel %vm347_vm6, %v308_v54, %v326_v48  ;;  %v1144_v61 = vsel %vm347_vm6, %v309_v57, %v327_v50  ;;  %v418_v54 = vld [vmem:[#allocation5] sm:$0xff] }
  0xe4   : > { %v362_v9 = vmul.f32 %v1140_v58, %v1140_v58  ;;  %v363_v13 = vmul.f32 %v1144_v61, %v1144_v61  ;;  %v393_v48 = vsel %vm347_vm6, %v388_v43, %v392_v39  ;;  %v395_v49 = vsel %vm347_vm6, %v390_v46, %v394_v41  ;;  %v422_v57 = vld [vmem:[#allocation5 + $0x20] sm:$0xff] }
  0xe6   : > { %v372_v20 = vmul.f32 %v362_v9, %v1140_v58  ;;  %v373_v23 = vmul.f32 %v363_v13, %v1144_v61  ;;  %v396_v36 = vrot.slane %v362_v9, 4  ;;  %v398_v37 = vrot.slane %v363_v13, 4 }
  0xe8   : > { %v339_v59 = vpop.permute.xlu0 %338  ;;  %v397_v42 = vsel %vm347_vm6, %v392_v39, %v396_v36 }
  0xe9   : > { %v1146_v62 = vsel %vm342_vm7, %v337_v45, %v339_v59  ;;  %v1148_v63 = vsel %vm342_vm7, %v339_v59, %v341_v44  ;;  %v217_v8 = vpop.permute.xlu1 %216  ;;  %v399_v45 = vsel %vm347_vm6, %v394_v41, %v398_v37  ;;  %v423_v59 = vld [vmem:[#allocation5 + $0x28] sm:$0xff] }
  0xea   : > { %v364_v4 = vmul.f32 %v1146_v62, %v1146_v62  ;;  %v365_v5 = vmul.f32 %v1148_v63, %v1148_v63  ;;  %v222_v16 = vsel %vm220_vm8, %v217_v8, %v219_v7 }
  0xeb   : > { %v1194_v25 = vsel %vm347_vm6, %v1120_v3, %v222_v16  ;;  %v368_v3 = vmul.f32 %v1187_v21, %v1164_v10 }
  0xec   : > { %v374_v11 = vmul.f32 %v364_v4, %v1146_v62  ;;  %v375_v12 = vmul.f32 %v365_v5, %v1148_v63  ;;  %v400_v32 = vrot.slane %v364_v4, 4  ;;  %v402_v34 = vrot.slane %v365_v5, 4 }
  0xee   : > { %v416_v17 = vsel %vm347_vm6, %v374_v11, 1.0  ;;  %v417_v18 = vsel %vm347_vm6, %v375_v12, 1.0  ;;  %v401_v38 = vsel %vm347_vm6, %v396_v36, %v400_v32  ;;  %v403_v40 = vsel %vm347_vm6, %v398_v37, %v402_v34 }
  0xef   : > { %444 = vmatpush.msra.mxu0 %v416_v17  ;;  %702 = vmatpush.msra.mxu2 %v416_v17 }
  0xf0   : > { %479 = vmatpush.msra.mxu1 %v417_v18  ;;  %716 = vmatpush.msra.mxu3 %v417_v18  ;;  %v215_v22 = vpop.permute.xlu0 %214 }
  0xf1   : > { %v221_v26 = vsel %vm220_vm8, %v215_v22, %v217_v8  ;;  %445 = vmatpush.msra.mxu0 %v372_v20  ;;  %703 = vmatpush.msra.mxu2 %v372_v20 }
  0xf2   : > { %v1201_v28 = vsel %vm347_vm6, %v1118_v2, %v221_v26  ;;  %480 = vmatpush.msra.mxu1 %v373_v23  ;;  %717 = vmatpush.msra.mxu3 %v373_v23  ;;  %v357_v2 = vmul.f32 %v1194_v25, %v1194_v25 }
  0xf3   : > { %446 = vmatpush.msra.mxu0 %v370_v27  ;;  %704 = vmatpush.msra.mxu2 %v370_v27  ;;  %v356_v30 = vmul.f32 %v1201_v28, %v1201_v28 }
  0xf4   : > { %481 = vmatpush.msra.mxu1 %v371_v29  ;;  %718 = vmatpush.msra.mxu3 %v371_v29  ;;  %v367_v35 = vmul.f32 %v357_v2, %v1194_v25  ;;  %v387_v47 = vrot.slane %v357_v2, 4 }
  0xf5   : > { %447 = vmatpush.msra.mxu0 %v368_v3  ;;  %705 = vmatpush.msra.mxu2 %v368_v3  ;;  %v366_v33 = vmul.f32 %v356_v30, %v1201_v28  ;;  %v386_v44 = vrot.slane %v356_v30, 4 }
  0xf6   : > { %482 = vmatpush.msra.mxu1 %v369_v31  ;;  %719 = vmatpush.msra.mxu3 %v369_v31  ;;  %v391_v51 = vsel %vm347_vm6, %v387_v47, %v390_v46  ;;  %v415_v53 = vsel %vm347_vm6, %v1148_v63, %v387_v47 }
  0xf7   : > { %448 = vmatpush.msra.mxu0 %v366_v33  ;;  %706 = vmatpush.msra.mxu2 %v366_v33  ;;  %v389_v50 = vsel %vm347_vm6, %v386_v44, %v388_v43  ;;  %v414_v52 = vsel %vm347_vm6, %v1146_v62, %v386_v44 }
  0xf8   : > { %483 = vmatpush.msra.mxu1 %v367_v35  ;;  %720 = vmatpush.msra.mxu3 %v367_v35 }
  0xf9   : > { %449 = vmatpush.msra.mxu0 %v401_v38  ;;  %707 = vmatpush.msra.mxu2 %v401_v38 }
  0xfa   : > { %484 = vmatpush.msra.mxu1 %v403_v40  ;;  %721 = vmatpush.msra.mxu3 %v403_v40 }
  0xfb   : > { %450 = vmatpush.msra.mxu0 %v397_v42  ;;  %708 = vmatpush.msra.mxu2 %v397_v42 }
  0xfc   : > { %485 = vmatpush.msra.mxu1 %v399_v45  ;;  %722 = vmatpush.msra.mxu3 %v399_v45 }
  0xfd   : > { %451 = vmatpush.msra.mxu0 %v393_v48  ;;  %709 = vmatpush.msra.mxu2 %v393_v48 }
  0xfe   : > { %486 = vmatpush.msra.mxu1 %v395_v49  ;;  %723 = vmatpush.msra.mxu3 %v395_v49 }
  0xff   : > { %452 = vmatpush.msra.mxu0 %v389_v50  ;;  %710 = vmatpush.msra.mxu2 %v389_v50 }
 0x100   : > { %487 = vmatpush.msra.mxu1 %v391_v51  ;;  %724 = vmatpush.msra.mxu3 %v391_v51 }
 0x101   : > { %453 = vmatpush.msra.mxu0 %v414_v52  ;;  %711 = vmatpush.msra.mxu2 %v414_v52 }
 0x102   : > { %488 = vmatpush.msra.mxu1 %v415_v53  ;;  %725 = vmatpush.msra.mxu3 %v415_v53 }
 0x103   : > { %454 = vmatpush.msra.mxu0 %v1140_v58  ;;  %712 = vmatpush.msra.mxu2 %v1140_v58  ;;  %v420_v58 = vld [vmem:[#allocation5 + $0x10] sm:$0xff] }
 0x104   : > { %489 = vmatpush.msra.mxu1 %v1144_v61  ;;  %726 = vmatpush.msra.mxu3 %v1144_v61 }
 0x105   : > { %455 = vmatpush.msra.mxu0 %v1152_v1  ;;  %713 = vmatpush.msra.mxu2 %v1152_v1 }
 0x106   : > { %490 = vmatpush.msra.mxu1 %v1159_v6  ;;  %727 = vmatpush.msra.mxu3 %v1159_v6 }
 0x107   : > { %456 = vmatpush.msra.mxu0 %v1164_v10  ;;  %714 = vmatpush.msra.mxu2 %v1164_v10 }
 0x108   : > { %491 = vmatpush.msra.mxu1 %v1171_v14  ;;  %728 = vmatpush.msra.mxu3 %v1171_v14 }
 0x109   : > { %457 = vmatpush.msra.mxu0 %v1201_v28  ;;  %715 = vmatpush.msra.mxu2 %v1201_v28 }
 0x10a   : > { %492 = vmatpush.msra.mxu1 %v1194_v25  ;;  %729 = vmatpush.msra.mxu3 %v1194_v25 }
 0x10b   : > { %684 = vmatmul.msk.f32.vlgmr.msra.gmra.mxu0 %vm255_vm5, %v418_v54  ;;  %690 = vmatmul.msk.f32.vlgmr.msra.gmra.mxu1 %vm255_vm5, %v418_v54 }
 0x10c   : > { %687 = vmatmul.msk.f32.vlgmr.msra.gmra.mxu2 %vm255_vm5, %v421_v55  ;;  %693 = vmatmul.msk.f32.vlgmr.msra.gmra.mxu3 %vm255_vm5, %v421_v55 }
 0x113   : > { %685 = vmatmul.msk.f32.gmra.mxu0 %vm255_vm5, %v419_v56  ;;  %691 = vmatmul.msk.f32.gmra.mxu1 %vm255_vm5, %v419_v56 }
 0x114   : > { %688 = vmatmul.msk.f32.gmra.mxu2 %vm255_vm5, %v422_v57  ;;  %694 = vmatmul.msk.f32.gmra.mxu3 %vm255_vm5, %v422_v57 }
 0x11b   : > { %686 = vmatmul.msk.f32.gmra.mxu0 %vm255_vm5, %v420_v58  ;;  %692 = vmatmul.msk.f32.gmra.mxu1 %vm255_vm5, %v420_v58 }
 0x11c   : > { %689 = vmatmul.msk.f32.gmra.mxu2 %vm255_vm5, %v423_v59  ;;  %695 = vmatmul.msk.f32.gmra.mxu3 %vm255_vm5, %v423_v59 }
 0x188   : > { %v459_v60 = vpop.f32.mrf.mxu0  ;;  %v494_v61 = vpop.f32.mrf.mxu1 }
 0x189   : > { %v512_v62 = vmul.f32 -10.0, %v459_v60  ;;  %v513_v63 = vmul.f32 -10.0, %v494_v61 }
 0x18b   : > { %v514_v0 = vmin.f32 %v512_v62, 60.0  ;;  %v515_v1 = vmin.f32 %v513_v63, 60.0 }
 0x18d   : > { %v516_v4 = vmul.f32 1.442695, %v514_v0  ;;  %v518_v5 = vmul.f32 1.442695, %v515_v1 }
 0x18f   : > { %816 = vpow2.f32 %v516_v4  ;;  %v468_v6 = vpop.f32.mrf.mxu2  ;;  %v503_v10 = vpop.f32.mrf.mxu3 }
 0x190   : > { %818 = vpow2.f32 %v518_v5  ;;  %v462_v15 = vpop.f32.mrf.mxu0  ;;  %v497_v19 = vpop.f32.mrf.mxu1 }
 0x195   : > { %v817_v7 = vpop.eup %816 }
 0x196   : > { %v819_v8 = vpop.eup %818  ;;  %v530_v9 = vmul.f32 9.974182, %v817_v7  ;;  %v520_v11 = vmul.f32 4.481689, %v817_v7  ;;  %v540_v13 = vmul.f32 24.53253, %v817_v7 }
 0x197   : > { %v531_v12 = vmul.f32 9.974182, %v819_v8  ;;  %v521_v16 = vmul.f32 4.481689, %v819_v8  ;;  %v541_v18 = vmul.f32 24.53253, %v819_v8  ;;  %v471_v26 = vpop.f32.mrf.mxu2  ;;  %v506_v28 = vpop.f32.mrf.mxu3 }
 0x198   : > { %v532_v14 = vadd.f32 1.0, %v530_v9  ;;  %v522_v20 = vadd.f32 1.0, %v520_v11  ;;  %v550_v21 = vmul.f32 49.40245, %v817_v7  ;;  %v542_v22 = vadd.f32 1.0, %v540_v13  ;;  %v465_v30 = vpop.f32.mrf.mxu0  ;;  %v500_v32 = vpop.f32.mrf.mxu1 }
 0x199   : > { %v533_v17 = vadd.f32 1.0, %v531_v12  ;;  %v523_v23 = vadd.f32 1.0, %v521_v16  ;;  %v551_v24 = vmul.f32 49.40245, %v819_v8  ;;  %v543_v25 = vadd.f32 1.0, %v541_v18 }
 0x19a   : > { %820 = vrcp.f32 %v532_v14  ;;  %v552_v27 = vadd.f32 1.0, %v550_v21 }
 0x19b   : > { %822 = vrcp.f32 %v533_v17  ;;  %v553_v29 = vadd.f32 1.0, %v551_v24 }
 0x19c   : > { %824 = vrcp.f32 %v522_v20 }
 0x19d   : > { %826 = vrcp.f32 %v542_v22 }
 0x19e   : > { %828 = vrcp.f32 %v523_v23 }
 0x19f   : > { %830 = vrcp.f32 %v543_v25  ;;  %v474_v41 = vpop.f32.mrf.mxu2  ;;  %v509_v47 = vpop.f32.mrf.mxu3 }
 0x1a0   : > { %v821_v3 = vpop.eup %820  ;;  %832 = vrcp.f32 %v552_v27 }
 0x1a1   : > { %v823_v31 = vpop.eup %822  ;;  %834 = vrcp.f32 %v553_v29  ;;  %v536_v37 = vmul.f32 %v821_v3, %v468_v6 }
 0x1a2   : > { %v825_v2 = vpop.eup %824  ;;  %v537_v42 = vmul.f32 %v823_v31, %v503_v10 }
 0x1a3   : > { %v827_v33 = vpop.eup %826  ;;  %v526_v34 = vmul.f32 %v825_v2, %v465_v30 }
 0x1a4   : > { %v829_v35 = vpop.eup %828  ;;  %v546_v43 = vmul.f32 %v827_v33, %v471_v26 }
 0x1a5   : > { %v831_v36 = vpop.eup %830  ;;  %v528_v38 = vadd.f32 %v526_v34, %v462_v15  ;;  %v527_v39 = vmul.f32 %v829_v35, %v500_v32 }
 0x1a6   : > { %v833_v40 = vpop.eup %832  ;;  %v547_v48 = vmul.f32 %v831_v36, %v506_v28 }
 0x1a7   : > { %v538_v44 = vadd.f32 %v536_v37, %v528_v38  ;;  %v529_v45 = vadd.f32 %v527_v39, %v497_v19  ;;  %v835_v46 = vpop.eup %834  ;;  %v556_v50 = vmul.f32 %v833_v40, %v474_v41 }
 0x1a8   : > { %v557_v54 = vmul.f32 %v835_v46, %v509_v47 }
 0x1a9   : > { %v548_v49 = vadd.f32 %v546_v43, %v538_v44  ;;  %v539_v51 = vadd.f32 %v537_v42, %v529_v45 }
 0x1ab   : > { %v558_v52 = vadd.f32 %v556_v50, %v548_v49  ;;  %v549_v53 = vadd.f32 %v547_v48, %v539_v51 }
 0x1ad   : > { %560 = vst [vmem:[%s196_s12] sm:$0xff] %v558_v52  ;;  %v559_v55 = vadd.f32 %v557_v54, %v549_v53 }
 0x1af   : > { %561 = vst [vmem:[%s196_s12 + $0x8] sm:$0xff] %v559_v55 }
 0x1b0   : > { %923 = shalt.err (!%p920_p13)
}
 0x1b1   : > { %739 = dma.vmem_to_hbm [thread:$0]  (%p1081_p4), %s579_s23, 256, %s581_s25, %s563_s27  }
 0x1b2 PF: > { %s592_s24 = sand.u32 1, %s962_s9   ;;  %p750_p0 = pnand %p679_p6, %p1089_p7 }
 0x1b3   : > { %s593_s8 = scalar_lea.sflag [#allocation4], %s592_s24 }
 0x1b4   : > { %p751_p2 = pneg %p750_p0 }
 0x1b6   : > { %957 = dma.done.wait (%p751_p2), %s593_s8, 256  }
 0x1b7   : > { %959 = vsyncadd (%p751_p2), %s593_s8, 4294967040  ;;  %s19_s14 = sadd.s32 1, %s982_s14   ;;  %s1305_s9 = smov %s966_s10 }
 0x1b8   : > { %p16_p5 = scmp.ge.s32.totalorder %s19_s14, 4   ;;  %s1306_s10 = smov %s970_s11 }
 0x1b9   : > { %s1307_s11 = smov %s1087_s4  ;;  %s1308_s12 = smov %s978_s13 }
 0x1ba   : > { %s1309_s13 = smov %s1311_s26  ;;  %18 = sbr.rel (!%p16_p5) target bundleno = 7 (0x7), region = 89 }
 0x1bf   :  { %599 = vsyncpa [#allocation3], 1 }
 0x1c0   :  { %601 = vsyncpa [#allocation3 + $0x1], 1 }
 0x1c1   :  { %602 = vsyncpa [#allocation6], 1 }
 0x1c2   :  { %603 = vsyncpa [#allocation4], 1 }
 0x1c3   :  { %605 = vsyncpa [#allocation4 + $0x1], 1 }

</bundles_post_ra>
